<compile_context>
chip_gen: v7x
topology: tpu7x:2x2x1
jax: 0.10.0
libtpu: 0.0.40
codegen_flags: <defaults>
</compile_context>

<pallas_src>
import jax
import jax.numpy as jnp
import numpy as np
from jax.experimental import pallas as pl
from jax.experimental.pallas import tpu as pltpu


def _round_up(x, m):
    return (x + m - 1) // m * m


def _mlp_kernel(x_ref, w1_ref, b1_ref, w2_ref, b2_ref, o_ref):
    # x_ref : (TILE_R, Din) f32     w1_ref: (Din, Dmid) bf16   b1_ref: (1, Dmid) f32
    # w2_ref: (Dmid, Dout) bf16     b2_ref: (1, Dout) f32      o_ref : (TILE_R, Dout) f32
    x = x_ref[...].astype(jnp.bfloat16)
    h = jnp.dot(x, w1_ref[...], preferred_element_type=jnp.float32)
    h = jnp.maximum(h + b1_ref[...], 0.0)                       # Linear1 + ReLU (f32)
    o = jnp.dot(h.astype(jnp.bfloat16), w2_ref[...],
                preferred_element_type=jnp.float32)
    o_ref[...] = (o + b2_ref[...]).astype(o_ref.dtype)          # Linear2


def mlp_forward(x, w1_k, b1_k, w2_k, b2_k, *, tile_r=512):
    """
    x:    (..., in_channels) float32
    w1_k: (Din, Dmid) bf16, b1_k: (1, Dmid) f32
    w2_k: (Dmid, Dout) bf16, b2_k: (1, Dout) f32
    Returns (..., Dout) float32.
    """
    lead_shape = x.shape[:-1]
    din = x.shape[-1]
    dmid = w1_k.shape[1]
    dout = w2_k.shape[1]

    xf = x.reshape(-1, din).astype(jnp.float32)
    R = xf.shape[0]

    # Keep >= 2 row tiles when possible so the "parallel" axis shards across
    # v7x's two TensorCores; rows tile must stay a multiple of 8 (sublanes).
    if R <= 2 * tile_r:
        tile_r = max(8, _round_up(pl.cdiv(R, 2), 8))
    grid_r = pl.cdiv(R, tile_r)  # ragged last tile handled by edge masking

    out = pl.pallas_call(
        _mlp_kernel,
        out_shape=jax.ShapeDtypeStruct((R, dout), jnp.float32),
        grid_spec=pltpu.PrefetchScalarGridSpec(
            num_scalar_prefetch=0,
            grid=(grid_r,),
            in_specs=[
                pl.BlockSpec((tile_r, din), lambda i: (i, 0)),   # x row tile
                pl.BlockSpec((din, dmid), lambda i: (0, 0)),     # W1 (resident)
                pl.BlockSpec((1, dmid), lambda i: (0, 0)),       # b1
                pl.BlockSpec((dmid, dout), lambda i: (0, 0)),    # W2 (resident)
                pl.BlockSpec((1, dout), lambda i: (0, 0)),       # b2
            ],
            out_specs=pl.BlockSpec((tile_r, dout), lambda i: (i, 0)),
        ),
        compiler_params=pltpu.CompilerParams(
            dimension_semantics=("parallel",),    # shard row tiles across TCs
            vmem_limit_bytes=32 * 1024 * 1024,    # tiny footprint; safe on all gens
        ),
    )(xf, w1_k, b1_k, w2_k, b2_k)

    return out.reshape(*lead_shape, dout)


class MLPPallas:
    """JAX/Pallas port of the PyTorch MLP: Linear -> ReLU -> Linear."""

    def __init__(self, in_channels, out_channels, mid_channels, key):
        self.in_channels = in_channels
        self.out_channels = out_channels
        self.mid_channels = mid_channels

        # PyTorch nn.Linear default init: U(-1/sqrt(fan_in), 1/sqrt(fan_in)).
        k1, k2, k3, k4 = jax.random.split(key, 4)
        bound1 = 1.0 / float(np.sqrt(in_channels))
        bound2 = 1.0 / float(np.sqrt(mid_channels))
        # Reference weights kept in PyTorch layout (out_features, in_features), f32.
        self.w1 = jax.random.uniform(k1, (mid_channels, in_channels),
                                     jnp.float32, -bound1, bound1)
        self.b1 = jax.random.uniform(k2, (mid_channels,), jnp.float32, -bound1, bound1)
        self.w2 = jax.random.uniform(k3, (out_channels, mid_channels),
                                     jnp.float32, -bound2, bound2)
        self.b2 = jax.random.uniform(k4, (out_channels,), jnp.float32, -bound2, bound2)

        # Static kernel-side prep hoisted out of the hot path:
        # transpose to (in, out), weights cast to bf16 (halves VMEM / weight DMA),
        # biases stay f32 so the add + ReLU run at full precision.
        self.w1_k = self.w1.T.astype(jnp.bfloat16)             # (Din, Dmid)
        self.b1_k = self.b1.reshape(1, mid_channels)           # (1, Dmid) f32
        self.w2_k = self.w2.T.astype(jnp.bfloat16)             # (Dmid, Dout)
        self.b2_k = self.b2.reshape(1, out_channels)           # (1, Dout) f32

    def __call__(self, x):
        return mlp_forward(x, self.w1_k, self.b1_k, self.w2_k, self.b2_k)


def _reference(mlp, x):
    # Pure-JAX reference (PyTorch semantics): ReLU(x @ W1^T + b1) @ W2^T + b2.
    h = jnp.maximum(x @ mlp.w1.T + mlp.b1, 0.0)
    return h @ mlp.w2.T + mlp.b2


if __name__ == "__main__":
    key = jax.random.PRNGKey(0)
    kx, kx2, kp = jax.random.split(key, 3)

    # Small shapes consistent with the module: batch=2, seq=16, in=4, mid=32, out=4.
    B, S, Cin, Cmid, Cout = 2, 16, 4, 32, 4
    mlp = MLPPallas(Cin, Cout, Cmid, kp)

    # Case 1: evenly-divisible rows (R = 32 -> 2 parallel tiles of 16).
    x = jax.random.normal(kx, (B, S, Cin), dtype=jnp.float32)
    y = jax.block_until_ready(mlp(x))
    y_ref = _reference(mlp, x)
    assert y.shape == (B, S, Cout) and y.dtype == jnp.float32
    assert jnp.allclose(y, y_ref, atol=3e-2, rtol=3e-2), \
        f"max abs err {float(jnp.max(jnp.abs(y - y_ref)))}"

    # Case 2: ragged row count (R = 39) to exercise the masked edge tile.
    x2 = jax.random.normal(kx2, (3, 13, Cin), dtype=jnp.float32)
    y2 = jax.block_until_ready(mlp(x2))
    y2_ref = _reference(mlp, x2)
    assert y2.shape == (3, 13, Cout)
    assert jnp.allclose(y2, y2_ref, atol=3e-2, rtol=3e-2), \
        f"max abs err {float(jnp.max(jnp.abs(y2 - y2_ref)))}"

    print("KERNEL_OK")
</pallas_src>

<mosaic_0001>
module attributes {stable_mosaic.version = 11 : i64} {
  func.func @_mlp_kernel(%arg0: i32, %arg1: memref<16x4xf32, #tpu.memory_space<vmem>>, %arg2: memref<4x32xbf16, #tpu.memory_space<vmem>>, %arg3: memref<1x32xf32, #tpu.memory_space<vmem>>, %arg4: memref<32x4xbf16, #tpu.memory_space<vmem>>, %arg5: memref<1x4xf32, #tpu.memory_space<vmem>>, %arg6: memref<16x4xf32, #tpu.memory_space<vmem>>) attributes {dimension_semantics = [#tpu.dimension_semantics<parallel>], iteration_bounds = array<i64: 2>, scalar_prefetch = 0 : i64, scratch_operands = 0 : i64, tpu.core_type = #tpu.core_type<tc>, window_params = [{transform_indices = @transform_0, window_bounds = array<i64: 16, 4>}, {pipeline_mode = #tpu.pipeline_mode<synchronous>, transform_indices = @transform_1, window_bounds = array<i64: 4, 32>}, {pipeline_mode = #tpu.pipeline_mode<synchronous>, transform_indices = @transform_2, window_bounds = array<i64: 1, 32>}, {pipeline_mode = #tpu.pipeline_mode<synchronous>, transform_indices = @transform_3, window_bounds = array<i64: 32, 4>}, {pipeline_mode = #tpu.pipeline_mode<synchronous>, transform_indices = @transform_4, window_bounds = array<i64: 1, 4>}, {transform_indices = @transform_5, window_bounds = array<i64: 16, 4>}]} {
    %c0 = arith.constant 0 : index
    %c0_0 = arith.constant 0 : index
    %0 = vector.load %arg1[%c0, %c0_0] : memref<16x4xf32, #tpu.memory_space<vmem>>, vector<16x4xf32>
    %1 = arith.truncf %0 : vector<16x4xf32> to vector<16x4xbf16>
    %c0_1 = arith.constant 0 : index
    %c0_2 = arith.constant 0 : index
    %2 = vector.load %arg2[%c0_1, %c0_2] : memref<4x32xbf16, #tpu.memory_space<vmem>>, vector<4x32xbf16>
    %cst = arith.constant dense<0.000000e+00> : vector<16x32xf32>
    %3 = tpu.matmul %1, %2, %cst {dimension_numbers = #tpu.dot_dimension_numbers<[1], [0], [0], [1], [0, 0, 1, 1], [], []>} : vector<16x4xbf16>, vector<4x32xbf16>, vector<16x32xf32> -> vector<16x32xf32>
    %c0_3 = arith.constant 0 : index
    %c0_4 = arith.constant 0 : index
    %4 = vector.load %arg3[%c0_3, %c0_4] : memref<1x32xf32, #tpu.memory_space<vmem>>, vector<1x32xf32>
    %5 = vector.broadcast %4 : vector<1x32xf32> to vector<16x32xf32>
    %6 = arith.addf %3, %5 : vector<16x32xf32>
    %cst_5 = arith.constant 0.000000e+00 : f32
    %7 = vector.broadcast %cst_5 : f32 to vector<16x32xf32>
    %8 = arith.maximumf %6, %7 : vector<16x32xf32>
    %9 = arith.truncf %8 : vector<16x32xf32> to vector<16x32xbf16>
    %c0_6 = arith.constant 0 : index
    %c0_7 = arith.constant 0 : index
    %10 = vector.load %arg4[%c0_6, %c0_7] : memref<32x4xbf16, #tpu.memory_space<vmem>>, vector<32x4xbf16>
    %cst_8 = arith.constant dense<0.000000e+00> : vector<16x4xf32>
    %11 = tpu.matmul %9, %10, %cst_8 {dimension_numbers = #tpu.dot_dimension_numbers<[1], [0], [0], [1], [0, 0, 1, 1], [], []>} : vector<16x32xbf16>, vector<32x4xbf16>, vector<16x4xf32> -> vector<16x4xf32>
    %c0_9 = arith.constant 0 : index
    %c0_10 = arith.constant 0 : index
    %12 = vector.load %arg5[%c0_9, %c0_10] : memref<1x4xf32, #tpu.memory_space<vmem>>, vector<1x4xf32>
    %13 = vector.broadcast %12 : vector<1x4xf32> to vector<16x4xf32>
    %14 = arith.addf %11, %13 : vector<16x4xf32>
    %c0_11 = arith.constant 0 : index
    %c0_12 = arith.constant 0 : index
    %15 = vector.load %arg6[%c0_11, %c0_12] : memref<16x4xf32, #tpu.memory_space<vmem>>, vector<16x4xf32>
    tpu.vector_store %arg6[%c0_11, %c0_12], %14 {strides = array<i32>} : memref<16x4xf32, #tpu.memory_space<vmem>>, vector<16x4xf32>,
    return
  }
  func.func @transform_0(%arg0: i32) -> (i32, i32) {
    %c0_i32 = arith.constant 0 : i32
    %c0_i32_0 = arith.constant 0 : i32
    return %arg0, %c0_i32 : i32, i32
  }
  func.func @transform_1(%arg0: i32) -> (i32, i32) {
    %c0_i32 = arith.constant 0 : i32
    %c0_i32_0 = arith.constant 0 : i32
    %c0_i32_1 = arith.constant 0 : i32
    return %c0_i32, %c0_i32_0 : i32, i32
  }
  func.func @transform_2(%arg0: i32) -> (i32, i32) {
    %c0_i32 = arith.constant 0 : i32
    %c0_i32_0 = arith.constant 0 : i32
    %c0_i32_1 = arith.constant 0 : i32
    return %c0_i32, %c0_i32_0 : i32, i32
  }
  func.func @transform_3(%arg0: i32) -> (i32, i32) {
    %c0_i32 = arith.constant 0 : i32
    %c0_i32_0 = arith.constant 0 : i32
    %c0_i32_1 = arith.constant 0 : i32
    return %c0_i32, %c0_i32_0 : i32, i32
  }
  func.func @transform_4(%arg0: i32) -> (i32, i32) {
    %c0_i32 = arith.constant 0 : i32
    %c0_i32_0 = arith.constant 0 : i32
    %c0_i32_1 = arith.constant 0 : i32
    return %c0_i32, %c0_i32_0 : i32, i32
  }
  func.func @transform_5(%arg0: i32) -> (i32, i32) {
    %c0_i32 = arith.constant 0 : i32
    %c0_i32_0 = arith.constant 0 : i32
    return %arg0, %c0_i32 : i32, i32
  }
}

</mosaic_0001>

<bundles_post_ra>
// kernel: tpu_custom_call.1
= control target key start
LH: loop header
LB: loop body
LE: loop exit
PB: predicated region body
PF: predicated region fallthrough
CT: control target
= control target key end

     0   :  { %s506_s18 = smov 0   ;;  %s541_s0 = inlined_call_operand.vmem [shape: f32[32,4], index: 0, kind: input, shape index: {}]   ;;  %s542_s1 = inlined_call_operand.vmem [shape: bf16[4,32], index: 1, kind: input, shape index: {}]   ;;  %s543_s2 = inlined_call_operand.vmem [shape: f32[1,32], index: 2, kind: input, shape index: {}]   ;;  %s544_s3 = inlined_call_operand.vmem [shape: bf16[32,4], index: 3, kind: input, shape index: {}]   ;;  %s545_s4 = inlined_call_operand.vmem [shape: f32[1,4], index: 4, kind: input, shape index: {}]   ;;  %s546_s5 = inlined_call_operand.vmem [shape: f32[32,4], index: 5, kind: output, shape index: {}]  }
   0x1 LB: > { %s418_s19 = sadd.s32 4294967295, %s472_s18   ;;  %p422_p0 = scmp.ge.s32.totalorder %s472_s18, 1  ;;  %s472_s18 = sphi %s506_s18, %s15_s18  }
   0x2   : > { %p188_p1 = scmp.lt.s32.totalorder %s472_s18, 3 }
   0x4   : > { %p189_p2 = pnand %p422_p0, %p188_p1 }
   0x5   : > { %v232_v0 = vld [vmem:[%s542_s1] sm:$0x3] (!%p189_p2)  ;;  %vm244_vm0 = vcmask (!%p189_p2), 1041408   ;;  %s423_s22 = sshll.u32 (!%p189_p2), %s418_s19, 1  ;;  %v474_v1 = vmov (!%p189_p2), 0.0   ;;  %vm475_vm1 = vmmov (!%p189_p2), 0  }
   0x6   : > { %192 = sbr.rel (%p189_p2) target bundleno = 456 (0x1c8), region = 40  ;;  %440 = vmatprep.subr.bf16.mxu0 (!%p189_p2), %v474_v1  ;;  %v246_v2 = vsel (!%p189_p2), %vm244_vm0, %v232_v0, 0  ;;  %442 = vmatprep.mubr.msk.bf16.mxu0 (!%p189_p2), %vm475_vm1, %v474_v1  ;;  %p217_p3 = scmp.lt.s32.totalorder (!%p189_p2), %s423_s22, 3  ;;  %vm240_vm2 = vcmask (!%p189_p2), 31744   ;;  %v464_v6 = vld [vmem:[%s544_s3] sm:$0xff] (!%p189_p2)   ;;  %v465_v7 = vld [vmem:[%s544_s3 + $0x8] sm:$0xff] (!%p189_p2)  }
   0x7   : > { %441 = vmatpush3.bf16.msra.mxu0 (!%p189_p2), %v246_v2  ;;  %446 = vmatprep.subr.bf16.mxu1 (!%p189_p2), %v474_v1  ;;  %v427_v8 = vld [vmem:[%s543_s2] ss:$0 sm:$0xff] (!%p189_p2)  ;;  %vm315_vm3 = vcmask (!%p189_p2), 261120  }
   0x8   : > { %450 = vmatprep.mubr.msk.bf16.mxu1 (!%p189_p2), %vm475_vm1, %v474_v1  ;;  %447 = vmatpush3.bf16.msra.mxu1 (!%p189_p2), %v464_v6  ;;  %v429_v18 = vld [vmem:[%s545_s4] ss:$0 sm:$0xff] (!%p189_p2) }
   0x9   : > { %448 = vmatprep.subr.bf16.mxu1 (!%p189_p2), %v474_v1 }
   0xc   : > { %449 = vmatpush3.bf16.msra.mxu1 (!%p189_p2), %v465_v7 }
   0xd   : > { %s548_s22 = smov (!%p217_p3, %s423_s22), 3 }
   0xe   : > { %s424_s23 = sshll.u32 %s548_s22, 3 }
   0xf   : > { %s220_s26 = scalar_lea.vmem %s541_s0, %s424_s23  ;;  %s226_s12 = scalar_lea.vmem %s546_s5, %s424_s23 }
  0x10   : > { %v229_v3 = vld [vmem:[%s220_s26] sm:$0xff]  ;;  %v230_v4 = vld [vmem:[%s220_s26 + $0x8] sm:$0xff] }
  0x11   : > { %v231_v5 = vpack.c.bf16 %v230_v4, %v229_v3 }
  0x13   : > { %443 = vmatmul.mubr.msk.bf16.vlgmr.msra.gmra.mrb[0].mxu0 %vm240_vm2, %v231_v5 }
  0xe6   : > { %v282_v9 = vpop.f32.mrb[0].mxu0 }
  0xe7   : > { %v283_v10 = vadd.f32 %v427_v8, %v282_v9  ;;  %v444_v11 = vpop.f32.mrb[1].mxu0 }
  0xe8   : > { %v285_v12 = vpop.f32.mrb[2].mxu0 }
  0xe9   : > { %v286_v13 = vadd.f32 %v427_v8, %v285_v12  ;;  %v445_v14 = vpop.f32.mrb[3].mxu0  ;;  %v289_v15 = vmax.f32 %v283_v10, 0.0 }
  0xeb   : > { %v290_v16 = vmax.f32 %v286_v13, 0.0 }
  0xed   : > { %v291_v17 = vpack.c.bf16 %v290_v16, %v289_v15 }
  0xef   : > { %451 = vmatmul.mubr.msk.bf16.vlgmr.msra.gmra.mrb[0].mxu1 %vm315_vm3, %v291_v17 }
 0x1c2   : > { %v353_v19 = vpop.f32.mrb[0].mxu1 }
 0x1c3   : > { %v354_v20 = vadd.f32 %v429_v18, %v353_v19  ;;  %v452_v21 = vpop.f32.mrb[1].mxu1 }
 0x1c4   : > { %v356_v22 = vpop.f32.mrb[2].mxu1 }
 0x1c5   : > { %360 = vst.msk [vmem:[%s226_s12] sm:$0xff] %vm240_vm2, %v354_v20  ;;  %v357_v23 = vadd.f32 %v429_v18, %v356_v22  ;;  %v453_v24 = vpop.f32.mrb[3].mxu1 }
 0x1c7   : > { %361 = vst.msk [vmem:[%s226_s12 + $0x8] sm:$0xff] %vm240_vm2, %v357_v23 }
 0x1c8 PF: > { %s15_s18 = sadd.s32 1, %s472_s18  }
 0x1c9   : > { %p12_p4 = scmp.ge.s32.totalorder %s15_s18, 4  }
 0x1cb   :  { %14 = sbr.rel (!%p12_p4) target bundleno = 1 (0x1), region = 70 }

</bundles_post_ra>
